<compile_context>
chip_gen: v5e
topology: v5e:2x2
jax: 0.10.0
libtpu: 0.0.40
codegen_flags: <defaults>
</compile_context>

<pallas_src>
import functools

import jax
import jax.numpy as jnp
from jax.experimental import pallas as pl
from jax.experimental.pallas import tpu as pltpu


# ---------------------------------------------------------------------------
# Kernel
# ---------------------------------------------------------------------------
def caption_only_kernel(cls_ref, wp_ref, bp_ref,
                        w1_ref, b1_ref, w2_ref, b2_ref, w3_ref, b3_ref,
                        out_ref):
    """Fused: pooler (dense+tanh) -> MLP (Linear/ReLU x2 -> Linear).

    Weights arrive as bf16 (halves HBM/VMEM traffic, doubles MXU throughput on
    v6e/v7x); activations are cast to bf16 only for the matmuls, accumulation and
    all elementwise math (tanh / ReLU / bias add) stay in f32.
    """
    x = cls_ref[...]  # (TB, HP) f32

    # BERT-style pooler: pooler_output = tanh(cls @ Wp + bp)
    pooled = jnp.tanh(
        jnp.dot(x.astype(jnp.bfloat16), wp_ref[...],
                preferred_element_type=jnp.float32) + bp_ref[...]
    )

    # text_proj MLP: hidden -> latent -> latent -> output_dim, ReLU between layers.
    h1 = jnp.maximum(
        jnp.dot(pooled.astype(jnp.bfloat16), w1_ref[...],
                preferred_element_type=jnp.float32) + b1_ref[...],
        0.0,
    )
    h2 = jnp.maximum(
        jnp.dot(h1.astype(jnp.bfloat16), w2_ref[...],
                preferred_element_type=jnp.float32) + b2_ref[...],
        0.0,
    )
    out = jnp.dot(h2.astype(jnp.bfloat16), w3_ref[...],
                  preferred_element_type=jnp.float32) + b3_ref[...]

    out_ref[...] = out.astype(out_ref.dtype)


# ---------------------------------------------------------------------------
# Wrapper
# ---------------------------------------------------------------------------
def _round_up(x: int, m: int) -> int:
    return ((x + m - 1) // m) * m


def pad_params_for_tpu(params):
    """Zero-pad feature dims to multiples of 128; weights -> bf16, biases stay f32."""
    def pad_w(w):
        fi, fo = w.shape
        wp = jnp.pad(w, ((0, _round_up(fi, 128) - fi), (0, _round_up(fo, 128) - fo)))
        return wp.astype(jnp.bfloat16)

    def pad_b(b):
        f = b.shape[1]
        return jnp.pad(b, ((0, 0), (0, _round_up(f, 128) - f))).astype(jnp.float32)

    return {
        "wp": pad_w(params["wp"]), "bp": pad_b(params["bp"]),
        "w1": pad_w(params["w1"]), "b1": pad_b(params["b1"]),
        "w2": pad_w(params["w2"]), "b2": pad_b(params["b2"]),
        "w3": pad_w(params["w3"]), "b3": pad_b(params["b3"]),
    }


@functools.partial(jax.jit, static_argnames=("output_dim", "batch_tile"))
def caption_only_forward(cls_hidden, padded_params, *, output_dim, batch_tile=128):
    """cls_hidden: (B, H) f32 — the [CLS] token hidden state from the encoder body."""
    B, H = cls_hidden.shape
    p = padded_params
    HP = p["wp"].shape[0]     # padded hidden
    LP = p["w1"].shape[1]     # padded latent
    OP = p["w3"].shape[1]     # padded output

    # Batch tiling: multiple of 8 (f32 sublane); pad batch up to a whole number of tiles.
    TB = min(batch_tile, _round_up(B, 8))
    Bp = _round_up(B, TB)
    num_tiles = Bp // TB

    x = jnp.pad(cls_hidden.astype(jnp.float32), ((0, Bp - B), (0, HP - H)))

    # VMEM budget: resident bf16 weights (double-buffered by the pipeline), f32 biases,
    # double-buffered f32 activation tiles, plus headroom for in-kernel intermediates.
    weight_bytes = 2 * 2 * (HP * HP + HP * LP + LP * LP + LP * OP)
    bias_bytes = 2 * 4 * (HP + 2 * LP + OP)
    act_bytes = 2 * 4 * TB * (HP + OP)
    vmem_limit = weight_bytes + bias_bytes + act_bytes + 4 * TB * (2 * LP) + (8 << 20)

    resident = lambda i: (0, 0)          # weights/biases: same block every step
    batched = lambda i: (i, 0)           # activations: walk the batch tiles

    grid_spec = pltpu.PrefetchScalarGridSpec(
        num_scalar_prefetch=0,
        grid=(num_tiles,),
        in_specs=[
            pl.BlockSpec((TB, HP), batched),     # cls tile
            pl.BlockSpec((HP, HP), resident),    # wp
            pl.BlockSpec((1, HP), resident),     # bp
            pl.BlockSpec((HP, LP), resident),    # w1
            pl.BlockSpec((1, LP), resident),     # b1
            pl.BlockSpec((LP, LP), resident),    # w2
            pl.BlockSpec((1, LP), resident),     # b2
            pl.BlockSpec((LP, OP), resident),    # w3
            pl.BlockSpec((1, OP), resident),     # b3
        ],
        out_specs=pl.BlockSpec((TB, OP), batched),
    )

    out_padded = pl.pallas_call(
        caption_only_kernel,
        out_shape=jax.ShapeDtypeStruct((Bp, OP), jnp.float32),
        grid_spec=grid_spec,
        compiler_params=pltpu.CompilerParams(
            dimension_semantics=("parallel",),   # shards batch tiles across v7x's 2 TCs
            vmem_limit_bytes=int(vmem_limit),
        ),
    )(x, p["wp"], p["bp"], p["w1"], p["b1"], p["w2"], p["b2"], p["w3"], p["b3"])

    return out_padded[:B, :output_dim]


# ---------------------------------------------------------------------------
# Params / reference
# ---------------------------------------------------------------------------
def init_params(key, hidden_size, latent_size, output_dim):
    ks = jax.random.split(key, 8)

    def lin(k, fan_in, fan_out):
        scale = 1.0 / jnp.sqrt(jnp.float32(fan_in))
        return jax.random.uniform(k, (fan_in, fan_out), jnp.float32, -scale, scale)

    return {
        # encoder pooler (produces 'pooler_output')
        "wp": lin(ks[0], hidden_size, hidden_size),
        "bp": jnp.zeros((1, hidden_size), jnp.float32),
        # text_proj MLP: hidden -> latent -> latent -> output_dim
        "w1": lin(ks[1], hidden_size, latent_size),
        "b1": jnp.zeros((1, latent_size), jnp.float32),
        "w2": lin(ks[2], latent_size, latent_size),
        "b2": jnp.zeros((1, latent_size), jnp.float32),
        "w3": lin(ks[3], latent_size, output_dim),
        "b3": jnp.zeros((1, output_dim), jnp.float32),
    }


def reference_forward(cls_hidden, params):
    """Plain-JAX reference mirroring the kernel's mixed precision (bf16 matmul, f32 acc)."""
    def mm(a, w):
        return jnp.dot(a.astype(jnp.bfloat16), w.astype(jnp.bfloat16),
                       preferred_element_type=jnp.float32)

    pooled = jnp.tanh(mm(cls_hidden, params["wp"]) + params["bp"])
    h1 = jnp.maximum(mm(pooled, params["w1"]) + params["b1"], 0.0)
    h2 = jnp.maximum(mm(h1, params["w2"]) + params["b2"], 0.0)
    return mm(h2, params["w3"]) + params["b3"]


# ---------------------------------------------------------------------------
# Driver
# ---------------------------------------------------------------------------
if __name__ == "__main__":
    # Small shapes consistent with the module: batch=2, seq=8, hidden=32, latent=32, out=16
    B, S, H, LATENT, OUT_DIM, VOCAB = 2, 8, 32, 32, 16, 64

    key = jax.random.PRNGKey(0)
    k_tok, k_emb, k_par = jax.random.split(key, 3)

    # TODO(synk): the pretrained AutoModel transformer body is replaced by a deterministic
    # synthetic token-embedding encoder; only its pooler head is reproduced in-kernel.
    input_ids = jax.random.randint(k_tok, (B, S), 0, VOCAB, dtype=jnp.int32)
    tok_emb_table = jax.random.normal(k_emb, (VOCAB, H), jnp.float32) * 0.02
    last_hidden = jnp.take(tok_emb_table, input_ids, axis=0)   # (B, S, H)
    cls_hidden = last_hidden[:, 0, :]                          # (B, H) — [CLS] token

    params = init_params(k_par, H, LATENT, OUT_DIM)
    padded_params = pad_params_for_tpu(params)

    pred = caption_only_forward(cls_hidden, padded_params, output_dim=OUT_DIM)
    jax.block_until_ready(pred)

    # Correctness check against a plain-JAX reference with identical mixed-precision math.
    ref = reference_forward(cls_hidden, params)
    assert pred.shape == (B, OUT_DIM)
    assert jnp.allclose(pred, ref, atol=1e-3, rtol=1e-3), float(jnp.max(jnp.abs(pred - ref)))

    print("KERNEL_OK")
</pallas_src>

<mosaic_0001>
module attributes {stable_mosaic.version = 11 : i64} {
  func.func @caption_only_kernel(%arg0: i32, %arg1: memref<8x128xf32, #tpu.memory_space<vmem>>, %arg2: memref<128x128xbf16, #tpu.memory_space<vmem>>, %arg3: memref<1x128xf32, #tpu.memory_space<vmem>>, %arg4: memref<128x128xbf16, #tpu.memory_space<vmem>>, %arg5: memref<1x128xf32, #tpu.memory_space<vmem>>, %arg6: memref<128x128xbf16, #tpu.memory_space<vmem>>, %arg7: memref<1x128xf32, #tpu.memory_space<vmem>>, %arg8: memref<128x128xbf16, #tpu.memory_space<vmem>>, %arg9: memref<1x128xf32, #tpu.memory_space<vmem>>, %arg10: memref<8x128xf32, #tpu.memory_space<vmem>>) attributes {dimension_semantics = [#tpu.dimension_semantics<parallel>], iteration_bounds = array<i64: 1>, scalar_prefetch = 0 : i64, scratch_operands = 0 : i64, tpu.core_type = #tpu.core_type<tc>, window_params = [{transform_indices = @transform_0, window_bounds = array<i64: 8, 128>}, {pipeline_mode = #tpu.pipeline_mode<synchronous>, transform_indices = @transform_1, window_bounds = array<i64: 128, 128>}, {pipeline_mode = #tpu.pipeline_mode<synchronous>, transform_indices = @transform_2, window_bounds = array<i64: 1, 128>}, {pipeline_mode = #tpu.pipeline_mode<synchronous>, transform_indices = @transform_3, window_bounds = array<i64: 128, 128>}, {pipeline_mode = #tpu.pipeline_mode<synchronous>, transform_indices = @transform_4, window_bounds = array<i64: 1, 128>}, {pipeline_mode = #tpu.pipeline_mode<synchronous>, transform_indices = @transform_5, window_bounds = array<i64: 128, 128>}, {pipeline_mode = #tpu.pipeline_mode<synchronous>, transform_indices = @transform_6, window_bounds = array<i64: 1, 128>}, {pipeline_mode = #tpu.pipeline_mode<synchronous>, transform_indices = @transform_7, window_bounds = array<i64: 128, 128>}, {pipeline_mode = #tpu.pipeline_mode<synchronous>, transform_indices = @transform_8, window_bounds = array<i64: 1, 128>}, {transform_indices = @transform_9, window_bounds = array<i64: 8, 128>}]} {
    %c0 = arith.constant 0 : index
    %c0_0 = arith.constant 0 : index
    %0 = vector.load %arg1[%c0, %c0_0] : memref<8x128xf32, #tpu.memory_space<vmem>>, vector<8x128xf32>
    %1 = arith.truncf %0 : vector<8x128xf32> to vector<8x128xbf16>
    %c0_1 = arith.constant 0 : index
    %c0_2 = arith.constant 0 : index
    %2 = vector.load %arg2[%c0_1, %c0_2] : memref<128x128xbf16, #tpu.memory_space<vmem>>, vector<128x128xbf16>
    %cst = arith.constant dense<0.000000e+00> : vector<8x128xf32>
    %3 = tpu.matmul %1, %2, %cst {dimension_numbers = #tpu.dot_dimension_numbers<[1], [0], [0], [1], [0, 0, 1, 1], [], []>} : vector<8x128xbf16>, vector<128x128xbf16>, vector<8x128xf32> -> vector<8x128xf32>
    %c0_3 = arith.constant 0 : index
    %c0_4 = arith.constant 0 : index
    %4 = vector.load %arg3[%c0_3, %c0_4] : memref<1x128xf32, #tpu.memory_space<vmem>>, vector<1x128xf32>
    %5 = vector.broadcast %4 : vector<1x128xf32> to vector<8x128xf32>
    %6 = arith.addf %3, %5 : vector<8x128xf32>
    %7 = math.tanh %6 : vector<8x128xf32>
    %8 = arith.truncf %7 : vector<8x128xf32> to vector<8x128xbf16>
    %c0_5 = arith.constant 0 : index
    %c0_6 = arith.constant 0 : index
    %9 = vector.load %arg4[%c0_5, %c0_6] : memref<128x128xbf16, #tpu.memory_space<vmem>>, vector<128x128xbf16>
    %cst_7 = arith.constant dense<0.000000e+00> : vector<8x128xf32>
    %10 = tpu.matmul %8, %9, %cst_7 {dimension_numbers = #tpu.dot_dimension_numbers<[1], [0], [0], [1], [0, 0, 1, 1], [], []>} : vector<8x128xbf16>, vector<128x128xbf16>, vector<8x128xf32> -> vector<8x128xf32>
    %c0_8 = arith.constant 0 : index
    %c0_9 = arith.constant 0 : index
    %11 = vector.load %arg5[%c0_8, %c0_9] : memref<1x128xf32, #tpu.memory_space<vmem>>, vector<1x128xf32>
    %12 = vector.broadcast %11 : vector<1x128xf32> to vector<8x128xf32>
    %13 = arith.addf %10, %12 : vector<8x128xf32>
    %cst_10 = arith.constant 0.000000e+00 : f32
    %14 = vector.broadcast %cst_10 : f32 to vector<8x128xf32>
    %15 = arith.maximumf %13, %14 : vector<8x128xf32>
    %16 = arith.truncf %15 : vector<8x128xf32> to vector<8x128xbf16>
    %c0_11 = arith.constant 0 : index
    %c0_12 = arith.constant 0 : index
    %17 = vector.load %arg6[%c0_11, %c0_12] : memref<128x128xbf16, #tpu.memory_space<vmem>>, vector<128x128xbf16>
    %cst_13 = arith.constant dense<0.000000e+00> : vector<8x128xf32>
    %18 = tpu.matmul %16, %17, %cst_13 {dimension_numbers = #tpu.dot_dimension_numbers<[1], [0], [0], [1], [0, 0, 1, 1], [], []>} : vector<8x128xbf16>, vector<128x128xbf16>, vector<8x128xf32> -> vector<8x128xf32>
    %c0_14 = arith.constant 0 : index
    %c0_15 = arith.constant 0 : index
    %19 = vector.load %arg7[%c0_14, %c0_15] : memref<1x128xf32, #tpu.memory_space<vmem>>, vector<1x128xf32>
    %20 = vector.broadcast %19 : vector<1x128xf32> to vector<8x128xf32>
    %21 = arith.addf %18, %20 : vector<8x128xf32>
    %cst_16 = arith.constant 0.000000e+00 : f32
    %22 = vector.broadcast %cst_16 : f32 to vector<8x128xf32>
    %23 = arith.maximumf %21, %22 : vector<8x128xf32>
    %24 = arith.truncf %23 : vector<8x128xf32> to vector<8x128xbf16>
    %c0_17 = arith.constant 0 : index
    %c0_18 = arith.constant 0 : index
    %25 = vector.load %arg8[%c0_17, %c0_18] : memref<128x128xbf16, #tpu.memory_space<vmem>>, vector<128x128xbf16>
    %cst_19 = arith.constant dense<0.000000e+00> : vector<8x128xf32>
    %26 = tpu.matmul %24, %25, %cst_19 {dimension_numbers = #tpu.dot_dimension_numbers<[1], [0], [0], [1], [0, 0, 1, 1], [], []>} : vector<8x128xbf16>, vector<128x128xbf16>, vector<8x128xf32> -> vector<8x128xf32>
    %c0_20 = arith.constant 0 : index
    %c0_21 = arith.constant 0 : index
    %27 = vector.load %arg9[%c0_20, %c0_21] : memref<1x128xf32, #tpu.memory_space<vmem>>, vector<1x128xf32>
    %28 = vector.broadcast %27 : vector<1x128xf32> to vector<8x128xf32>
    %29 = arith.addf %26, %28 : vector<8x128xf32>
    %c0_22 = arith.constant 0 : index
    %c0_23 = arith.constant 0 : index
    %30 = vector.load %arg10[%c0_22, %c0_23] : memref<8x128xf32, #tpu.memory_space<vmem>>, vector<8x128xf32>
    tpu.vector_store %arg10[%c0_22, %c0_23], %29 {strides = array<i32>} : memref<8x128xf32, #tpu.memory_space<vmem>>, vector<8x128xf32>,
    return
  }
  func.func @transform_0(%arg0: i32) -> (i32, i32) {
    %c0_i32 = arith.constant 0 : i32
    %c0_i32_0 = arith.constant 0 : i32
    return %arg0, %c0_i32 : i32, i32
  }
  func.func @transform_1(%arg0: i32) -> (i32, i32) {
    %c0_i32 = arith.constant 0 : i32
    %c0_i32_0 = arith.constant 0 : i32
    %c0_i32_1 = arith.constant 0 : i32
    return %c0_i32, %c0_i32_0 : i32, i32
  }
  func.func @transform_2(%arg0: i32) -> (i32, i32) {
    %c0_i32 = arith.constant 0 : i32
    %c0_i32_0 = arith.constant 0 : i32
    %c0_i32_1 = arith.constant 0 : i32
    return %c0_i32, %c0_i32_0 : i32, i32
  }
  func.func @transform_3(%arg0: i32) -> (i32, i32) {
    %c0_i32 = arith.constant 0 : i32
    %c0_i32_0 = arith.constant 0 : i32
    %c0_i32_1 = arith.constant 0 : i32
    return %c0_i32, %c0_i32_0 : i32, i32
  }
  func.func @transform_4(%arg0: i32) -> (i32, i32) {
    %c0_i32 = arith.constant 0 : i32
    %c0_i32_0 = arith.constant 0 : i32
    %c0_i32_1 = arith.constant 0 : i32
    return %c0_i32, %c0_i32_0 : i32, i32
  }
  func.func @transform_5(%arg0: i32) -> (i32, i32) {
    %c0_i32 = arith.constant 0 : i32
    %c0_i32_0 = arith.constant 0 : i32
    %c0_i32_1 = arith.constant 0 : i32
    return %c0_i32, %c0_i32_0 : i32, i32
  }
  func.func @transform_6(%arg0: i32) -> (i32, i32) {
    %c0_i32 = arith.constant 0 : i32
    %c0_i32_0 = arith.constant 0 : i32
    %c0_i32_1 = arith.constant 0 : i32
    return %c0_i32, %c0_i32_0 : i32, i32
  }
  func.func @transform_7(%arg0: i32) -> (i32, i32) {
    %c0_i32 = arith.constant 0 : i32
    %c0_i32_0 = arith.constant 0 : i32
    %c0_i32_1 = arith.constant 0 : i32
    return %c0_i32, %c0_i32_0 : i32, i32
  }
  func.func @transform_8(%arg0: i32) -> (i32, i32) {
    %c0_i32 = arith.constant 0 : i32
    %c0_i32_0 = arith.constant 0 : i32
    %c0_i32_1 = arith.constant 0 : i32
    return %c0_i32, %c0_i32_0 : i32, i32
  }
  func.func @transform_9(%arg0: i32) -> (i32, i32) {
    %c0_i32 = arith.constant 0 : i32
    %c0_i32_0 = arith.constant 0 : i32
    return %arg0, %c0_i32 : i32, i32
  }
}

</mosaic_0001>

<bundles_post_ra>
// kernel: caption_only_forward.1
= control target key start
LH: loop header
LB: loop body
LE: loop exit
PB: predicated region body
PF: predicated region fallthrough
CT: control target
= control target key end

     0   :  { %14 = vsyncpa [#allocation3], 0  ;;  %s795_s0 = inlined_call_operand.vmem [shape: f32[8,128], index: 0, kind: input, shape index: {}]   ;;  %s796_s1 = inlined_call_operand.hbm [shape: bf16[128,128], index: 1, kind: input, shape index: {}]   ;;  %s797_s2 = inlined_call_operand.vmem [shape: f32[1,128], index: 2, kind: input, shape index: {}]   ;;  %s798_s3 = inlined_call_operand.hbm [shape: bf16[128,128], index: 3, kind: input, shape index: {}]   ;;  %s799_s4 = inlined_call_operand.vmem [shape: f32[1,128], index: 4, kind: input, shape index: {}]   ;;  %s800_s5 = inlined_call_operand.hbm [shape: bf16[128,128], index: 5, kind: input, shape index: {}]   ;;  %s801_s6 = inlined_call_operand.vmem [shape: f32[1,128], index: 6, kind: input, shape index: {}]   ;;  %s802_s7 = inlined_call_operand.hbm [shape: bf16[128,128], index: 7, kind: input, shape index: {}]   ;;  %s803_s8 = inlined_call_operand.vmem [shape: f32[1,128], index: 8, kind: input, shape index: {}]   ;;  %s804_s9 = inlined_call_operand.vmem [shape: f32[8,128], index: 9, kind: output, shape index: {}]  }
   0x1   :  { %15 = vsyncpa [#allocation5], 0 }
   0x2   :  { %16 = vsyncpa [#allocation8], 0  ;;  %s38_s11 = sshll.u32 %s798_s3, 4  ;;  %s709_s12 = smov [#allocation4]   ;;  %s39_s11 = int_to_ptr.hbm [resolvable:$true] %s38_s11 }
   0x3   :  { %s40_s13 = sshll.u32 %s709_s12, 4  ;;  %s23_s16 = sshll.u32 %s796_s1, 4  ;;  %s41_s13 = int_to_ptr.vmem [resolvable:$true] %s40_s13  ;;  %s24_s16 = int_to_ptr.hbm [resolvable:$true] %s23_s16 }
   0x4   :  { %s710_s17 = smov 64   ;;  %s711_s18 = smov 4  }
   0x5   :  { %46 = dma.hbm_to_vmem [thread:$0]  %s39_s11, 1024, %s41_s13, [#allocation5], %s710_s17, %s710_s17, %s711_s18  }
   0x6   :  { %s712_s19 = smov [#allocation2]   ;;  %s53_s23 = sshll.u32 %s800_s5, 4  ;;  %s54_s23 = int_to_ptr.hbm [resolvable:$true] %s53_s23 }
   0x7   :  { %s25_s20 = sshll.u32 %s712_s19, 4  ;;  %s68_s25 = sshll.u32 %s802_s7, 4  ;;  %s26_s20 = int_to_ptr.vmem [resolvable:$true] %s25_s20  ;;  %s69_s25 = int_to_ptr.hbm [resolvable:$true] %s68_s25 }
   0x8   :  { %31 = dma.hbm_to_vmem [thread:$0]  %s24_s16, 1024, %s26_s20, [#allocation3], %s710_s17, %s710_s17, %s711_s18  }
   0x9   :  { %s713_s26 = smov [#allocation6]   ;;  %s714_s1 = smov [#allocation7]  }
   0xa   :  { %s55_s27 = sshll.u32 %s713_s26, 4  ;;  %s70_s28 = sshll.u32 %s714_s1, 4  ;;  %s56_s27 = int_to_ptr.vmem [resolvable:$true] %s55_s27  ;;  %s71_s28 = int_to_ptr.vmem [resolvable:$true] %s70_s28 }
   0xb   :  { %61 = dma.hbm_to_vmem [thread:$0]  %s54_s23, 1024, %s56_s27, [#allocation5], %s710_s17, %s710_s17, %s711_s18  }
   0xc   :  { %76 = dma.hbm_to_vmem [thread:$0]  %s69_s25, 1024, %s71_s28, [#allocation8], %s710_s17, %s710_s17, %s711_s18  }
   0xd   :  { %703 = dma.done.wait [#allocation3], 1024  }
   0xe   :  { %704 = vsyncadd [#allocation3], 4294966272 }
   0xf   :  { %705 = dma.done.wait [#allocation5], 2048  }
  0x10   :  { %706 = vsyncadd [#allocation5], 4294965248 }
  0x11   :  { %707 = dma.done.wait [#allocation8], 1024  }
  0x12   :  { %708 = vsyncadd [#allocation8], 4294966272  ;;  %v570_v0 = vld [vmem:[#allocation2 + $0x38] sm:$0xff]  ;;  %v569_v1 = vld [vmem:[#allocation2 + $0x30] sm:$0xff] }
  0x13   :  { %165 = vmatpush.bf16.msra.mxu0 %v570_v0  ;;  %v578_v2 = vld [vmem:[#allocation4 + $0x38] sm:$0xff]  ;;  %v577_v3 = vld [vmem:[#allocation4 + $0x30] sm:$0xff]  ;;  %v568_v4 = vld [vmem:[#allocation2 + $0x28] sm:$0xff] }
  0x14   :  { %248 = vmatpush.bf16.msra.mxu1 %v578_v2  ;;  %v576_v5 = vld [vmem:[#allocation4 + $0x28] sm:$0xff]  ;;  %v567_v6 = vld [vmem:[#allocation2 + $0x20] sm:$0xff]  ;;  %v566_v8 = vld [vmem:[#allocation2 + $0x18] sm:$0xff] }
  0x15   :  { %v575_v7 = vld [vmem:[#allocation4 + $0x20] sm:$0xff]  ;;  %v574_v9 = vld [vmem:[#allocation4 + $0x18] sm:$0xff]  ;;  %v565_v10 = vld [vmem:[#allocation2 + $0x10] sm:$0xff] }
  0x16   :  { %v564_v11 = vld [vmem:[#allocation2 + $0x8] sm:$0xff]  ;;  %v563_v12 = vld [vmem:[#allocation2] sm:$0xff]  ;;  %v573_v15 = vld [vmem:[#allocation4 + $0x10] sm:$0xff] }
  0x17   :  { %166 = vmatpush.bf16.msra.mxu0 %v569_v1  ;;  %v95_v13 = vld [vmem:[%s795_s0] sm:$0xff]  ;;  %v572_v16 = vld [vmem:[#allocation4 + $0x8] sm:$0xff]  ;;  %v586_v18 = vld [vmem:[#allocation6 + $0x38] sm:$0xff] }
  0x18   :  { %249 = vmatpush.bf16.msra.mxu1 %v577_v3  ;;  %v96_v14 = vpack.c.bf16 %v95_v13, %v95_v13  ;;  %v571_v17 = vld [vmem:[#allocation4] sm:$0xff]  ;;  %331 = vmatpush.bf16.msra.mxu2 %v586_v18  ;;  %v585_v19 = vld [vmem:[#allocation6 + $0x30] sm:$0xff]  ;;  %v584_v20 = vld [vmem:[#allocation6 + $0x28] sm:$0xff] }
  0x19   :  { %v583_v21 = vld [vmem:[#allocation6 + $0x20] sm:$0xff]  ;;  %v582_v22 = vld [vmem:[#allocation6 + $0x18] sm:$0xff]  ;;  %v581_v24 = vld [vmem:[#allocation6 + $0x10] sm:$0xff] }
  0x1a   :  { %v601_v23 = vld [vmem:[%s797_s2] ss:$0 sm:$0xff]  ;;  %v580_v30 = vld [vmem:[#allocation6 + $0x8] sm:$0xff]  ;;  %v594_v32 = vld [vmem:[#allocation7 + $0x38] sm:$0xff] }
  0x1b   :  { %167 = vmatpush.bf16.msra.mxu0 %v568_v4  ;;  %v579_v31 = vld [vmem:[#allocation6] sm:$0xff]  ;;  %414 = vmatpush.bf16.msra.mxu3 %v594_v32  ;;  %v593_v33 = vld [vmem:[#allocation7 + $0x30] sm:$0xff]  ;;  %v592_v34 = vld [vmem:[#allocation7 + $0x28] sm:$0xff] }
  0x1c   :  { %250 = vmatpush.bf16.msra.mxu1 %v576_v5  ;;  %332 = vmatpush.bf16.msra.mxu2 %v585_v19  ;;  %v591_v35 = vld [vmem:[#allocation7 + $0x20] sm:$0xff]  ;;  %v590_v36 = vld [vmem:[#allocation7 + $0x18] sm:$0xff]  ;;  %v589_v37 = vld [vmem:[#allocation7 + $0x10] sm:$0xff] }
  0x1d   :  { %v602_v38 = vld [vmem:[%s799_s4] ss:$0 sm:$0xff]  ;;  %v588_v44 = vld [vmem:[#allocation7 + $0x8] sm:$0xff] }
  0x1e   :  { %v587_v45 = vld [vmem:[#allocation7] sm:$0xff] }
  0x1f   :  { %168 = vmatpush.bf16.msra.mxu0 %v567_v6  ;;  %415 = vmatpush.bf16.msra.mxu3 %v593_v33  ;;  %v603_v46 = vld [vmem:[%s801_s6] ss:$0 sm:$0xff] }
  0x20   :  { %251 = vmatpush.bf16.msra.mxu1 %v575_v7  ;;  %333 = vmatpush.bf16.msra.mxu2 %v584_v20  ;;  %v604_v52 = vld [vmem:[%s803_s8] ss:$0 sm:$0xff] }
  0x23   :  { %169 = vmatpush.bf16.msra.mxu0 %v566_v8  ;;  %416 = vmatpush.bf16.msra.mxu3 %v592_v34 }
  0x24   :  { %252 = vmatpush.bf16.msra.mxu1 %v574_v9  ;;  %334 = vmatpush.bf16.msra.mxu2 %v583_v21 }
  0x27   :  { %170 = vmatpush.bf16.msra.mxu0 %v565_v10  ;;  %417 = vmatpush.bf16.msra.mxu3 %v591_v35 }
  0x28   :  { %253 = vmatpush.bf16.msra.mxu1 %v573_v15  ;;  %335 = vmatpush.bf16.msra.mxu2 %v582_v22 }
  0x2b   :  { %171 = vmatpush.bf16.msra.mxu0 %v564_v11  ;;  %418 = vmatpush.bf16.msra.mxu3 %v590_v36 }
  0x2c   :  { %254 = vmatpush.bf16.msra.mxu1 %v572_v16  ;;  %336 = vmatpush.bf16.msra.mxu2 %v581_v24 }
  0x2f   :  { %172 = vmatpush.bf16.msra.mxu0 %v563_v12  ;;  %419 = vmatpush.bf16.msra.mxu3 %v589_v37 }
  0x30   :  { %255 = vmatpush.bf16.msra.mxu1 %v571_v17  ;;  %337 = vmatpush.bf16.msra.mxu2 %v580_v30 }
  0x32   :  { %173 = vmatmul.bf16.vlgmr.msra.gmra.mxu0 %v96_v14 }
  0x33   :  { %420 = vmatpush.bf16.msra.mxu3 %v588_v44 }
  0x34   :  { %338 = vmatpush.bf16.msra.mxu2 %v579_v31 }
  0x37   :  { %421 = vmatpush.bf16.msra.mxu3 %v587_v45 }
  0xaf   :  { %v174_v25 = vpop.f32.mrf.mxu0 }
  0xb0   :  { %v175_v26 = vadd.f32 %v601_v23, %v174_v25 }
  0xb2   :  { %605 = vtanh.f32 %v175_v26 }
  0xb7   :  { %v176_v27 = vpop.f32.mrf.mxu0 }
  0xb8   :  { %v606_v28 = vpop.eup %605 }
  0xb9   :  { %v179_v29 = vpack.c.bf16 %v606_v28, %v606_v28 }
  0xbb   :  { %256 = vmatmul.bf16.vlgmr.msra.gmra.mxu1 %v179_v29 }
 0x138   :  { %v257_v39 = vpop.f32.mrf.mxu1 }
 0x139   :  { %v258_v40 = vadd.f32 %v602_v38, %v257_v39 }
 0x13b   :  { %v261_v41 = vmax.f32 %v258_v40, 0.0 }
 0x13d   :  { %v262_v42 = vpack.c.bf16 %v261_v41, %v261_v41 }
 0x13f   :  { %339 = vmatmul.bf16.vlgmr.msra.gmra.mxu2 %v262_v42 }
 0x140   :  { %v259_v43 = vpop.f32.mrf.mxu1 }
 0x1c2   :  { %v340_v47 = vpop.f32.mrf.mxu2 }
 0x1c3   :  { %v341_v48 = vadd.f32 %v603_v46, %v340_v47 }
 0x1c5   :  { %v344_v49 = vmax.f32 %v341_v48, 0.0 }
 0x1c7   :  { %v345_v50 = vpack.c.bf16 %v344_v49, %v344_v49 }
 0x1c9   :  { %422 = vmatmul.bf16.vlgmr.msra.gmra.mxu3 %v345_v50 }
 0x1ca   :  { %v342_v51 = vpop.f32.mrf.mxu2 }
 0x24c   :  { %v423_v53 = vpop.f32.mrf.mxu3 }
 0x24d   :  { %v424_v54 = vadd.f32 %v604_v52, %v423_v53 }
 0x24f   :  { %427 = vst [vmem:[%s804_s9] sm:$0xff] %v424_v54 }
 0x254   :  { %v425_v55 = vpop.f32.mrf.mxu3 }
 0x255   :  { %432 = vsyncpa [#allocation3], 1 }
 0x256   :  { %433 = vsyncpa [#allocation5], 1 }
 0x257   :  { %434 = vsyncpa [#allocation8], 1 }

</bundles_post_ra>
